<compile_context>
chip_gen: v7x
topology: tpu7x:2x2x1
jax: 0.10.0
libtpu: 0.0.40
codegen_flags: <defaults>
</compile_context>

<pallas_src>
import jax
import jax.numpy as jnp
from jax.experimental import pallas as pl
from jax.experimental.pallas import tpu as pltpu

PAD = 128  # lane-padded feature width for input and hidden layers
SUB = 8    # f32 sublane granularity


def cnet3_kernel(x_ref, w_ref, pack_ref, out_ref):
    w1 = w_ref[0:PAD, :]            # (PAD, PAD) fc1 weight (zero-padded)
    w3 = w_ref[PAD:2 * PAD, :]      # (PAD, PAD) fc3 weight (zero-padded)
    b1 = pack_ref[0:1, :]           # (1, PAD) fc1 bias   (zero in padded lanes)
    b3 = pack_ref[1:2, :]           # (1, PAD) fc3 bias   (zero in padded lanes)
    wo = pack_ref[2:3, :]           # (1, PAD) q_out weight row (zero in padded lanes)
    bo = pack_ref[3:4, :]           # (1, PAD) q_out bias broadcast across all lanes

    # relu(fc1(cat[s, a]))
    h1 = jnp.maximum(
        jnp.dot(x_ref[...], w1, preferred_element_type=jnp.float32) + b1, 0.0)
    # relu(fc3(h1))
    h2 = jnp.maximum(
        jnp.dot(h1, w3, preferred_element_type=jnp.float32) + b3, 0.0)
    # q_out: VPU multiply + lane reduction instead of an H->1 MXU matmul.
    q = jnp.sum(h2 * wo, axis=-1, keepdims=True)             # (B, 1)
    # Lane-dense store: every lane of the output row holds q + bo.
    out_ref[...] = (q + bo).astype(out_ref.dtype)             # (B, PAD)


def cnet3_forward(s, a, packed_params):
    """Run CNet3 forward in a single gridless Pallas call (all data in VMEM)."""
    w_stack, pack = packed_params
    B = s.shape[0]
    Bp = ((B + SUB - 1) // SUB) * SUB                          # sublane-aligned batch
    sa = jnp.concatenate([s, a], axis=1).astype(jnp.float32)
    in_dim = sa.shape[1]
    x_pad = jnp.zeros((Bp, PAD), jnp.float32).at[:B, :in_dim].set(sa)

    vmem = pl.BlockSpec(memory_space=pltpu.MemorySpace.VMEM)
    flops = 2 * (2 * Bp * PAD * PAD) + 3 * Bp * PAD            # 2 matmuls + mul/reduce/add
    bytes_accessed = 4 * (Bp * PAD + 2 * PAD * PAD + 8 * PAD + Bp * PAD)

    out = pl.pallas_call(
        cnet3_kernel,
        out_shape=jax.ShapeDtypeStruct((Bp, PAD), jnp.float32),
        in_specs=[vmem, vmem, vmem],
        out_specs=vmem,
        cost_estimate=pl.CostEstimate(flops=flops, transcendentals=0,
                                      bytes_accessed=bytes_accessed),
    )(x_pad, w_stack, pack)
    return out[:B, :1]                                         # (B, 1)


cnet3_forward_jit = jax.jit(cnet3_forward)


def init_params(key, o_dim, a_dim, hidden=64):
    """Deterministic init mirroring nn.Linear defaults:
    W, b ~ U(-1/sqrt(fan_in), 1/sqrt(fan_in)); weights stored as (in, out)."""
    keys = jax.random.split(key, 6)

    def linear(kw, kb, fan_in, fan_out):
        bound = 1.0 / float(fan_in) ** 0.5
        w = jax.random.uniform(kw, (fan_in, fan_out), minval=-bound, maxval=bound,
                               dtype=jnp.float32)
        b = jax.random.uniform(kb, (fan_out,), minval=-bound, maxval=bound,
                               dtype=jnp.float32)
        return w, b

    w1, b1 = linear(keys[0], keys[1], o_dim + a_dim, hidden)
    # fc2 exists in the PyTorch module but is never used in forward(); omitted.
    w3, b3 = linear(keys[2], keys[3], hidden, hidden)
    wq, bq = linear(keys[4], keys[5], hidden, 1)
    return (w1, b1, w3, b3, wq[:, 0], bq[0])


def pack_params(raw_params, pad=PAD):
    """Zero-pad weights to (pad, pad), stack them, and pack biases + q_out row
    + q_out bias into one (8, pad) array."""
    w1, b1, w3, b3, wo, bo = raw_params
    in_dim, hidden = w1.shape
    w1p = jnp.zeros((pad, pad), jnp.float32).at[:in_dim, :hidden].set(w1)
    w3p = jnp.zeros((pad, pad), jnp.float32).at[:hidden, :hidden].set(w3)
    w_stack = jnp.concatenate([w1p, w3p], axis=0)              # (2*pad, pad)
    pack = jnp.zeros((8, pad), jnp.float32)
    pack = pack.at[0, :hidden].set(b1)
    pack = pack.at[1, :hidden].set(b3)
    pack = pack.at[2, :hidden].set(wo)
    pack = pack.at[3, :].set(bo)          # broadcast scalar bias across lanes
    return (w_stack, pack)


def cnet3_reference(s, a, raw_params):
    """Pure-JAX reference (unpadded) for correctness checking."""
    w1, b1, w3, b3, wo, bo = raw_params
    x = jnp.concatenate([s, a], axis=1)
    h1 = jnp.maximum(x @ w1 + b1, 0.0)
    h2 = jnp.maximum(h1 @ w3 + b3, 0.0)
    return h2 @ wo[:, None] + bo          # (B, 1)


if __name__ == "__main__":
    # Small shapes consistent with the module: batch=8, o_dim=16, a_dim=8, hidden=64
    B, O_DIM, A_DIM, HIDDEN = 8, 16, 8, 64

    key = jax.random.PRNGKey(0)
    k_s, k_a, k_p = jax.random.split(key, 3)

    s = jax.random.normal(k_s, (B, O_DIM), dtype=jnp.float32)
    a = jax.random.normal(k_a, (B, A_DIM), dtype=jnp.float32)

    raw = init_params(k_p, O_DIM, A_DIM, HIDDEN)
    packed = pack_params(raw)

    out = cnet3_forward_jit(s, a, packed)
    out = jax.block_until_ready(out)

    ref = cnet3_reference(s, a, raw)
    assert out.shape == (B, 1), out.shape
    assert jnp.allclose(out, ref, atol=1e-4, rtol=1e-4), "mismatch vs reference"

    print("KERNEL_OK")
</pallas_src>

<mosaic_0001>
module attributes {stable_mosaic.version = 11 : i64} {
  func.func @cnet3_kernel(%arg0: memref<8x128xf32, #tpu.memory_space<vmem>>, %arg1: memref<256x128xf32, #tpu.memory_space<vmem>>, %arg2: memref<8x128xf32, #tpu.memory_space<vmem>>, %arg3: memref<8x128xf32, #tpu.memory_space<vmem>>) attributes {dimension_semantics = [], scalar_prefetch = 0 : i64, scratch_operands = 0 : i64, tpu.core_type = #tpu.core_type<tc>} {
    %c0 = arith.constant 0 : index
    %c0_0 = arith.constant 0 : index
    %0 = vector.load %arg1[%c0, %c0_0] : memref<256x128xf32, #tpu.memory_space<vmem>>, vector<128x128xf32>
    %c128 = arith.constant 128 : index
    %c0_1 = arith.constant 0 : index
    %1 = vector.load %arg1[%c128, %c0_1] : memref<256x128xf32, #tpu.memory_space<vmem>>, vector<128x128xf32>
    %c0_2 = arith.constant 0 : index
    %c0_3 = arith.constant 0 : index
    %2 = vector.load %arg2[%c0_2, %c0_3] : memref<8x128xf32, #tpu.memory_space<vmem>>, vector<1x128xf32>
    %c1 = arith.constant 1 : index
    %c0_4 = arith.constant 0 : index
    %3 = vector.load %arg2[%c1, %c0_4] : memref<8x128xf32, #tpu.memory_space<vmem>>, vector<1x128xf32>
    %c2 = arith.constant 2 : index
    %c0_5 = arith.constant 0 : index
    %4 = vector.load %arg2[%c2, %c0_5] : memref<8x128xf32, #tpu.memory_space<vmem>>, vector<1x128xf32>
    %c3 = arith.constant 3 : index
    %c0_6 = arith.constant 0 : index
    %5 = vector.load %arg2[%c3, %c0_6] : memref<8x128xf32, #tpu.memory_space<vmem>>, vector<1x128xf32>
    %c0_7 = arith.constant 0 : index
    %c0_8 = arith.constant 0 : index
    %6 = vector.load %arg0[%c0_7, %c0_8] : memref<8x128xf32, #tpu.memory_space<vmem>>, vector<8x128xf32>
    %cst = arith.constant dense<0.000000e+00> : vector<8x128xf32>
    %7 = tpu.matmul %6, %0, %cst {dimension_numbers = #tpu.dot_dimension_numbers<[1], [0], [0], [1], [0, 0, 1, 1], [], []>} : vector<8x128xf32>, vector<128x128xf32>, vector<8x128xf32> -> vector<8x128xf32>
    %8 = vector.broadcast %2 : vector<1x128xf32> to vector<8x128xf32>
    %9 = arith.addf %7, %8 : vector<8x128xf32>
    %cst_9 = arith.constant 0.000000e+00 : f32
    %10 = vector.broadcast %cst_9 : f32 to vector<8x128xf32>
    %11 = arith.maximumf %9, %10 : vector<8x128xf32>
    %cst_10 = arith.constant dense<0.000000e+00> : vector<8x128xf32>
    %12 = tpu.matmul %11, %1, %cst_10 {dimension_numbers = #tpu.dot_dimension_numbers<[1], [0], [0], [1], [0, 0, 1, 1], [], []>} : vector<8x128xf32>, vector<128x128xf32>, vector<8x128xf32> -> vector<8x128xf32>
    %13 = vector.broadcast %3 : vector<1x128xf32> to vector<8x128xf32>
    %14 = arith.addf %12, %13 : vector<8x128xf32>
    %cst_11 = arith.constant 0.000000e+00 : f32
    %15 = vector.broadcast %cst_11 : f32 to vector<8x128xf32>
    %16 = arith.maximumf %14, %15 : vector<8x128xf32>
    %17 = vector.broadcast %4 : vector<1x128xf32> to vector<8x128xf32>
    %18 = arith.mulf %16, %17 : vector<8x128xf32>
    %cst_12 = arith.constant dense<0.000000e+00> : vector<8xf32>
    %19 = vector.multi_reduction <add>, %18, %cst_12 [1] : vector<8x128xf32> to vector<8xf32>
    %20 = vector.shape_cast %19 : vector<8xf32> to vector<8x1xf32>
    %21 = vector.broadcast %20 : vector<8x1xf32> to vector<8x128xf32>
    %22 = vector.broadcast %5 : vector<1x128xf32> to vector<8x128xf32>
    %23 = arith.addf %21, %22 : vector<8x128xf32>
    %c0_13 = arith.constant 0 : index
    %c0_14 = arith.constant 0 : index
    %24 = vector.load %arg3[%c0_13, %c0_14] : memref<8x128xf32, #tpu.memory_space<vmem>>, vector<8x128xf32>
    tpu.vector_store %arg3[%c0_13, %c0_14], %23 {strides = array<i32>} : memref<8x128xf32, #tpu.memory_space<vmem>>, vector<8x128xf32>,
    return
  }
}

</mosaic_0001>

<bundles_post_ra>
// kernel: cnet3_forward.1
= control target key start
LH: loop header
LB: loop body
LE: loop exit
PB: predicated region body
PF: predicated region fallthrough
CT: control target
= control target key end

     0   :  { %8 = vsyncpa [#allocation3], 0  ;;  %s419_s12 = smov [#allocation2]   ;;  %s491_s0 = inlined_call_operand.vmem [shape: f32[8,128], index: 0, kind: input, shape index: {}]   ;;  %s492_s1 = inlined_call_operand.hbm [shape: f32[256,128], index: 1, kind: input, shape index: {}]   ;;  %s493_s2 = inlined_call_operand.vmem [shape: f32[8,128], index: 2, kind: input, shape index: {}]   ;;  %s494_s3 = inlined_call_operand.vmem [shape: f32[8,128], index: 3, kind: output, shape index: {}]  }
   0x1   :  { %s16_s13 = sshll.u32 %s419_s12, 4  ;;  %s395_s16 = scalar_lea.hbm %s492_s1, 4096  ;;  %s17_s13 = int_to_ptr.vmem [resolvable:$true] %s16_s13 }
   0x2   :  { %p396_p0 = scmp.ne.s32.totalorder %s492_s1, %s395_s16  ;;  %p399_p1 = scmp.lt.u32.totalorder %s395_s16, %s492_s1 }
   0x4   :  { %p401_p2 = pnand %p399_p1, %p396_p0 }
   0x6   :  { %404 = shalt.err (!%p401_p2)
}
   0x7   :  { %s405_s21 = scalar_lea.vmem %s17_s13, 4096  ;;  %p410_p4 = scmp.lt.s32.totalorder %s17_s13, %s17_s13 }
   0x8   :  { %p406_p3 = scmp.ne.s32.totalorder %s17_s13, %s405_s21  ;;  %p411_p5 = scmp.lt.s32.totalorder %s405_s21, %s405_s21 }
   0xa   :  { %p412_p6 = por %p411_p5, %p410_p4 }
   0xc   :  { %p413_p7 = pnand %p412_p6, %p406_p3 }
   0xe   :  { %416 = shalt.err (!%p413_p7)
}
   0xf   :  { %s420_s22 = smov 128   ;;  %s421_s23 = smov 8  }
  0x10   :  { %22 = dma.hbm_to_vmem [thread:$0]  %s492_s1, 4096, %s17_s13, [#allocation3], %s420_s22, %s420_s22, %s421_s23  }
  0x11   :  { %417 = dma.done.wait [#allocation3], 4096  }
  0x12   :  { %418 = vsyncadd [#allocation3], 4294963200  ;;  %v422_v0 = vmov 0.0|0.0   ;;  %vm423_vm0 = vmmov 0   ;;  %v424_v1 = vmov 0.0   ;;  %v28_v2 = vld [vmem:[#allocation2] sm:$0xff] }
  0x13   :  { %341 = vmatprep.subr.bf16.mxu0 %v422_v0  ;;  %303 = vmatprep.mubr.msk.f32.mxu0 %vm423_vm0, %v424_v1  ;;  %v29_v3 = vld [vmem:[#allocation2 + $0x8] sm:$0xff]  ;;  %v30_v4 = vld [vmem:[#allocation2 + $0x10] sm:$0xff]  ;;  %v31_v6 = vld [vmem:[#allocation2 + $0x18] sm:$0xff] }
  0x14   :  { %365 = vmatprep.subr.bf16.mxu1 %v422_v0  ;;  %338 = vmatprep.mubr.msk.f32.mxu1 %vm423_vm0, %v424_v1  ;;  %v342_v5 = vpack.c.bf16 %v29_v3, %v28_v2  ;;  %v345_v7 = vpack.c.bf16 %v31_v6, %v30_v4  ;;  %v32_v8 = vld [vmem:[#allocation2 + $0x20] sm:$0xff]  ;;  %v33_v9 = vld [vmem:[#allocation2 + $0x28] sm:$0xff]  ;;  %v46_v12 = vld [vmem:[#allocation2 + $0x90] sm:$0xff] }
  0x15   :  { %v44_v10 = vld [vmem:[#allocation2 + $0x80] sm:$0xff]  ;;  %v45_v11 = vld [vmem:[#allocation2 + $0x88] sm:$0xff]  ;;  %v47_v13 = vld [vmem:[#allocation2 + $0x98] sm:$0xff]  ;;  %v348_v14 = vpack.c.bf16 %v33_v9, %v32_v8 }
  0x16   :  { %343 = vmatpush3.bf16.msra.mxu0 %v342_v5  ;;  %v366_v15 = vpack.c.bf16 %v45_v11, %v44_v10  ;;  %v34_v16 = vld [vmem:[#allocation2 + $0x30] sm:$0xff]  ;;  %v35_v17 = vld [vmem:[#allocation2 + $0x38] sm:$0xff]  ;;  %v369_v18 = vpack.c.bf16 %v47_v13, %v46_v12  ;;  %v48_v19 = vld [vmem:[#allocation2 + $0xa0] sm:$0xff] }
  0x17   :  { %344 = vmatprep.subr.bf16.mxu0 %v422_v0  ;;  %v49_v20 = vld [vmem:[#allocation2 + $0xa8] sm:$0xff]  ;;  %v351_v21 = vpack.c.bf16 %v35_v17, %v34_v16  ;;  %v36_v22 = vld [vmem:[#allocation2 + $0x40] sm:$0xff]  ;;  %v50_v25 = vld [vmem:[#allocation2 + $0xb0] sm:$0xff] }
  0x18   :  { %367 = vmatpush3.bf16.msra.mxu1 %v366_v15  ;;  %v37_v23 = vld [vmem:[#allocation2 + $0x48] sm:$0xff]  ;;  %v372_v24 = vpack.c.bf16 %v49_v20, %v48_v19  ;;  %v51_v26 = vld [vmem:[#allocation2 + $0xb8] sm:$0xff]  ;;  %v38_v28 = vld [vmem:[#allocation2 + $0x50] sm:$0xff] }
  0x19   :  { %368 = vmatprep.subr.bf16.mxu1 %v422_v0  ;;  %v354_v27 = vpack.c.bf16 %v37_v23, %v36_v22  ;;  %v39_v29 = vld [vmem:[#allocation2 + $0x58] sm:$0xff]  ;;  %v375_v30 = vpack.c.bf16 %v51_v26, %v50_v25  ;;  %v52_v31 = vld [vmem:[#allocation2 + $0xc0] sm:$0xff]  ;;  %v53_v32 = vld [vmem:[#allocation2 + $0xc8] sm:$0xff] }
  0x1a   :  { %346 = vmatpush3.bf16.msra.mxu0 %v345_v7  ;;  %v357_v33 = vpack.c.bf16 %v39_v29, %v38_v28  ;;  %v40_v34 = vld [vmem:[#allocation2 + $0x60] sm:$0xff]  ;;  %v41_v35 = vld [vmem:[#allocation2 + $0x68] sm:$0xff]  ;;  %v378_v36 = vpack.c.bf16 %v53_v32, %v52_v31  ;;  %v54_v37 = vld [vmem:[#allocation2 + $0xd0] sm:$0xff] }
  0x1b   :  { %347 = vmatprep.subr.bf16.mxu0 %v422_v0  ;;  %v55_v38 = vld [vmem:[#allocation2 + $0xd8] sm:$0xff]  ;;  %v360_v39 = vpack.c.bf16 %v41_v35, %v40_v34  ;;  %v42_v40 = vld [vmem:[#allocation2 + $0x70] sm:$0xff]  ;;  %v56_v43 = vld [vmem:[#allocation2 + $0xe0] sm:$0xff] }
  0x1c   :  { %370 = vmatpush3.bf16.msra.mxu1 %v369_v18  ;;  %v43_v41 = vld [vmem:[#allocation2 + $0x78] sm:$0xff]  ;;  %v381_v42 = vpack.c.bf16 %v55_v38, %v54_v37  ;;  %v57_v44 = vld [vmem:[#allocation2 + $0xe8] sm:$0xff]  ;;  %v64_v47 = vld [vmem:[%s491_s0] sm:$0xff] }
  0x1d   :  { %371 = vmatprep.subr.bf16.mxu1 %v422_v0  ;;  %v363_v45 = vpack.c.bf16 %v43_v41, %v42_v40  ;;  %v384_v46 = vpack.c.bf16 %v57_v44, %v56_v43  ;;  %v58_v48 = vld [vmem:[#allocation2 + $0xf0] sm:$0xff]  ;;  %v59_v49 = vld [vmem:[#allocation2 + $0xf8] sm:$0xff]  ;;  %v233_v51 = vld [vmem:[%s493_s2] ss:$0 sm:$0xff] }
  0x1e   :  { %349 = vmatpush3.bf16.msra.mxu0 %v348_v14  ;;  %v387_v50 = vpack.c.bf16 %v59_v49, %v58_v48  ;;  %v234_v56 = vld [vmem:[%s493_s2 + $0x1] ss:$0 sm:$0xff]  ;;  %v235_v60 = vld [vmem:[%s493_s2 + $0x2] ss:$0 sm:$0xff]  ;;  %v236_v63 = vld [vmem:[%s493_s2 + $0x3] ss:$0 sm:$0xff] }
  0x1f   :  { %350 = vmatprep.subr.bf16.mxu0 %v422_v0 }
  0x20   :  { %373 = vmatpush3.bf16.msra.mxu1 %v372_v24 }
  0x21   :  { %374 = vmatprep.subr.bf16.mxu1 %v422_v0 }
  0x22   :  { %352 = vmatpush3.bf16.msra.mxu0 %v351_v21 }
  0x23   :  { %353 = vmatprep.subr.bf16.mxu0 %v422_v0 }
  0x24   :  { %376 = vmatpush3.bf16.msra.mxu1 %v375_v30 }
  0x25   :  { %377 = vmatprep.subr.bf16.mxu1 %v422_v0 }
  0x26   :  { %355 = vmatpush3.bf16.msra.mxu0 %v354_v27 }
  0x27   :  { %356 = vmatprep.subr.bf16.mxu0 %v422_v0 }
  0x28   :  { %379 = vmatpush3.bf16.msra.mxu1 %v378_v36 }
  0x29   :  { %380 = vmatprep.subr.bf16.mxu1 %v422_v0 }
  0x2a   :  { %358 = vmatpush3.bf16.msra.mxu0 %v357_v33 }
  0x2b   :  { %359 = vmatprep.subr.bf16.mxu0 %v422_v0 }
  0x2c   :  { %382 = vmatpush3.bf16.msra.mxu1 %v381_v42 }
  0x2d   :  { %383 = vmatprep.subr.bf16.mxu1 %v422_v0 }
  0x2e   :  { %361 = vmatpush3.bf16.msra.mxu0 %v360_v39 }
  0x2f   :  { %362 = vmatprep.subr.bf16.mxu0 %v422_v0 }
  0x30   :  { %385 = vmatpush3.bf16.msra.mxu1 %v384_v46 }
  0x31   :  { %386 = vmatprep.subr.bf16.mxu1 %v422_v0 }
  0x32   :  { %364 = vmatpush3.bf16.msra.mxu0 %v363_v45 }
  0x34   :  { %388 = vmatpush3.bf16.msra.mxu1 %v387_v50 }
  0x35   :  { %304 = vmatmul.mubr.f32.vlgmr.msra.gmra.mrb[0].mxu0 %v64_v47 }
 0x108   :  { %v135_v52 = vpop.f32.mrb[0].mxu0 }
 0x109   :  { %v136_v53 = vadd.f32 %v233_v51, %v135_v52  ;;  %v305_v54 = vpop.f32.mrb[1].mxu0 }
 0x10b   :  { %v139_v55 = vmax.f32 %v136_v53, 0.0 }
 0x10d   :  { %339 = vmatmul.mubr.f32.vlgmr.msra.gmra.mrb[0].mxu1 %v139_v55 }
 0x1e0   :  { %v210_v57 = vpop.f32.mrb[0].mxu1 }
 0x1e1   :  { %v211_v58 = vadd.f32 %v234_v56, %v210_v57  ;;  %v340_v59 = vpop.f32.mrb[1].mxu1 }
 0x1e3   :  { %v214_v61 = vmax.f32 %v211_v58, 0.0 }
 0x1e5   :  { %v219_v62 = vmul.f32 %v235_v60, %v214_v61 }
 0x1e7   :  { %220 = vadd.xlane.f32.xlu0 %v219_v62 }
 0x274   :  { %v221_v0 = vpop.xlane.xlu0 %220 }
 0x275   :  { %v226_v1 = vadd.f32 %v236_v63, %v221_v0 }
 0x277   :  { %227 = vst [vmem:[%s494_s3] sm:$0xff] %v226_v1 }
 0x278   :  { %232 = vsyncpa [#allocation3], 1 }

</bundles_post_ra>
